<compile_context>
chip_gen: v6e
topology: v6e:2x2x1
jax: 0.10.0
libtpu: 0.0.40
codegen_flags: <defaults>
</compile_context>

<pallas_src>
import jax
import jax.numpy as jnp
from jax.experimental import pallas as pl
from jax.experimental.pallas import tpu as pltpu


def _mean_pool_kernel(x_ref, inv_ref, o_ref, acc_ref):
    # x_ref:   (TB, TS, TH)  input tile in VMEM
    # inv_ref: (TB, 1)       fp32 reciprocal lengths
    # o_ref:   (TB, TH)      output tile (resident across the S axis)
    # acc_ref: (TB, TH)      fp32 VMEM accumulator scratch
    s_idx = pl.program_id(2)

    @pl.when(s_idx == 0)
    def _init():
        acc_ref[...] = jnp.zeros_like(acc_ref)

    # Accumulate partial sums over this sequence tile in fp32.
    acc_ref[...] += jnp.sum(x_ref[...].astype(jnp.float32), axis=1)

    @pl.when(s_idx == pl.num_programs(2) - 1)
    def _finalize():
        o_ref[...] = (acc_ref[...] * inv_ref[...]).astype(o_ref.dtype)


def _largest_divisor_tile(dim, align, max_tile):
    """Largest t <= max_tile with t % align == 0 and dim % t == 0; else full dim."""
    if dim <= max_tile:
        return dim
    t = (max_tile // align) * align
    while t >= align:
        if dim % t == 0:
            return t
        t -= align
    return dim  # fall back to full extent (always legal for BlockSpec)


def baseline_forward(x, x_len):
    """x: (B, S, H); x_len: (B,) lengths (float or int). Returns (B, H)."""
    B, S, H = x.shape
    itemsize = x.dtype.itemsize
    sublane = max(8, 32 // itemsize)  # 8 for f32, 16 for bf16, 32 for int8

    # ---- tile selection (lane-dense, VMEM-budgeted) -------------------------
    # Batch tile: multiple of 8 (output sublane constraint) or full B.
    TB = _largest_divisor_tile(B, 8, 8)
    # Hidden tile: multiple of 128 (lane-dense output stores) or full H.
    TH = _largest_divisor_tile(H, 128, 1024)
    # Sequence tile: aim for ~4 MiB per input block so 2x double-buffered
    # inputs + resident output stay well under every generation's scoped VMEM.
    target_block_bytes = 4 * 1024 * 1024
    ts_target = max(sublane, target_block_bytes // max(1, TB * TH * itemsize))
    TS = _largest_divisor_tile(S, sublane, ts_target)

    grid = (B // TB, H // TH, S // TS)

    # Host-side fp32 reciprocal of the B length scalars.
    inv_len = (1.0 / x_len.astype(jnp.float32)).reshape(B, 1)

    # Explicit VMEM budget (conservative enough for v7x's 64 MiB physical /
    # 32 MiB scoped default; also raises v5e's 16 MiB scoped default).
    x_block_bytes = TB * TS * TH * itemsize
    vmem_limit = min(max(4 * x_block_bytes + (4 << 20), 16 << 20), 32 << 20)

    out = pl.pallas_call(
        _mean_pool_kernel,
        out_shape=jax.ShapeDtypeStruct((B, H), x.dtype),
        grid_spec=pltpu.PrefetchScalarGridSpec(
            num_scalar_prefetch=0,
            grid=grid,
            in_specs=[
                pl.BlockSpec((TB, TS, TH), lambda b, h, s: (b, s, h)),
                pl.BlockSpec((TB, 1), lambda b, h, s: (b, 0)),
            ],
            out_specs=pl.BlockSpec((TB, TH), lambda b, h, s: (b, h)),
            scratch_shapes=[pltpu.VMEM((TB, TH), jnp.float32)],
        ),
        compiler_params=pltpu.CompilerParams(
            dimension_semantics=("parallel", "parallel", "arbitrary"),
            vmem_limit_bytes=vmem_limit,
        ),
    )(x, inv_len)
    return out


if __name__ == "__main__":
    key = jax.random.PRNGKey(0)
    kx, kl = jax.random.split(key)

    B, S, H = 2, 8, 32
    x = jax.random.normal(kx, (B, S, H), dtype=jnp.float32)
    # lengths in [1, S]
    x_len = jax.random.randint(kl, (B,), 1, S + 1).astype(jnp.float32)

    out = baseline_forward(x, x_len)
    out = jax.block_until_ready(out)

    # reference check in plain JAX
    ref = jnp.sum(x, axis=1) / x_len.reshape(-1, 1)
    assert out.shape == (B, H)
    assert jnp.allclose(out, ref, atol=1e-5, rtol=1e-5)

    print("KERNEL_OK")
</pallas_src>

<mosaic_0001>
module attributes {stable_mosaic.version = 11 : i64} {
  func.func @_mean_pool_kernel(%arg0: i32, %arg1: i32, %arg2: i32, %arg3: memref<2x8x32xf32, #tpu.memory_space<vmem>>, %arg4: memref<2x1xf32, #tpu.memory_space<vmem>>, %arg5: memref<2x32xf32, #tpu.memory_space<vmem>>, %arg6: memref<2x32xf32, #tpu.memory_space<vmem>>) attributes {dimension_semantics = [#tpu.dimension_semantics<parallel>, #tpu.dimension_semantics<parallel>, #tpu.dimension_semantics<arbitrary>], iteration_bounds = array<i64: 1, 1, 1>, scalar_prefetch = 0 : i64, scratch_operands = 1 : i64, tpu.core_type = #tpu.core_type<tc>, window_params = [{transform_indices = @transform_0, window_bounds = array<i64: 2, 8, 32>}, {transform_indices = @transform_1, window_bounds = array<i64: 2, 1>}, {transform_indices = @transform_2, window_bounds = array<i64: 2, 32>}]} {
    %c0_i32 = arith.constant 0 : i32
    %0 = arith.cmpi eq, %arg2, %c0_i32 : i32
    %1 = arith.extui %0 : i1 to i32
    %c0_i32_0 = arith.constant 0 : i32
    %2 = arith.cmpi ne, %1, %c0_i32_0 : i32
    scf.if %2 {
      %cst_9 = arith.constant 0.000000e+00 : f32
      %11 = vector.broadcast %cst_9 : f32 to vector<2x32xf32>
      %c0_10 = arith.constant 0 : index
      %c0_11 = arith.constant 0 : index
      %12 = vector.load %arg6[%c0_10, %c0_11] : memref<2x32xf32, #tpu.memory_space<vmem>>, vector<2x32xf32>
      tpu.vector_store %arg6[%c0_10, %c0_11], %11 {strides = array<i32>} : memref<2x32xf32, #tpu.memory_space<vmem>>, vector<2x32xf32>,
    } else {
    }
    %c0 = arith.constant 0 : index
    %c0_1 = arith.constant 0 : index
    %3 = vector.load %arg6[%c0, %c0_1] : memref<2x32xf32, #tpu.memory_space<vmem>>, vector<2x32xf32>
    %c0_2 = arith.constant 0 : index
    %c0_3 = arith.constant 0 : index
    %c0_4 = arith.constant 0 : index
    %4 = vector.load %arg3[%c0_2, %c0_3, %c0_4] : memref<2x8x32xf32, #tpu.memory_space<vmem>>, vector<2x8x32xf32>
    %cst = arith.constant dense<0.000000e+00> : vector<2x32xf32>
    %5 = vector.multi_reduction <add>, %4, %cst [1] : vector<2x8x32xf32> to vector<2x32xf32>
    %6 = arith.addf %3, %5 : vector<2x32xf32>
    %c0_5 = arith.constant 0 : index
    %c0_6 = arith.constant 0 : index
    %7 = vector.load %arg6[%c0_5, %c0_6] : memref<2x32xf32, #tpu.memory_space<vmem>>, vector<2x32xf32>
    tpu.vector_store %arg6[%c0_5, %c0_6], %6 {strides = array<i32>} : memref<2x32xf32, #tpu.memory_space<vmem>>, vector<2x32xf32>,
    %c0_i32_7 = arith.constant 0 : i32
    %8 = arith.cmpi eq, %arg2, %c0_i32_7 : i32
    %9 = arith.extui %8 : i1 to i32
    %c0_i32_8 = arith.constant 0 : i32
    %10 = arith.cmpi ne, %9, %c0_i32_8 : i32
    scf.if %10 {
      %c0_9 = arith.constant 0 : index
      %c0_10 = arith.constant 0 : index
      %11 = vector.load %arg6[%c0_9, %c0_10] : memref<2x32xf32, #tpu.memory_space<vmem>>, vector<2x32xf32>
      %c0_11 = arith.constant 0 : index
      %c0_12 = arith.constant 0 : index
      %12 = vector.load %arg4[%c0_11, %c0_12] : memref<2x1xf32, #tpu.memory_space<vmem>>, vector<2x1xf32>
      %13 = vector.broadcast %12 : vector<2x1xf32> to vector<2x32xf32>
      %14 = arith.mulf %11, %13 : vector<2x32xf32>
      %c0_13 = arith.constant 0 : index
      %c0_14 = arith.constant 0 : index
      %15 = vector.load %arg5[%c0_13, %c0_14] : memref<2x32xf32, #tpu.memory_space<vmem>>, vector<2x32xf32>
      tpu.vector_store %arg5[%c0_13, %c0_14], %14 {strides = array<i32>} : memref<2x32xf32, #tpu.memory_space<vmem>>, vector<2x32xf32>,
    } else {
    }
    return
  }
  func.func @transform_0(%arg0: i32, %arg1: i32, %arg2: i32) -> (i32, i32, i32) {
    %c0_i32 = arith.constant 0 : i32
    return %arg0, %arg2, %arg1 : i32, i32, i32
  }
  func.func @transform_1(%arg0: i32, %arg1: i32, %arg2: i32) -> (i32, i32) {
    %c0_i32 = arith.constant 0 : i32
    %c0_i32_0 = arith.constant 0 : i32
    return %arg0, %c0_i32 : i32, i32
  }
  func.func @transform_2(%arg0: i32, %arg1: i32, %arg2: i32) -> (i32, i32) {
    %c0_i32 = arith.constant 0 : i32
    return %arg0, %arg1 : i32, i32
  }
}

</mosaic_0001>

<bundles_post_ra>
// kernel: tpu_custom_call.1
= control target key start
LH: loop header
LB: loop body
LE: loop exit
PB: predicated region body
PF: predicated region fallthrough
CT: control target
= control target key end

     0   :  { %7 = vsyncpa [#allocation4], 0  ;;  %s169_s0 = inlined_call_operand.hbm [shape: f32[2,8,32], index: 0, kind: input, shape index: {}]   ;;  %s170_s1 = inlined_call_operand.vmem [shape: f32[2,1], index: 1, kind: input, shape index: {}]   ;;  %s171_s2 = inlined_call_operand.hbm [shape: f32[2,32], index: 2, kind: output, shape index: {}]  }
   0x1   :  { %8 = vsyncpa [#allocation5], 0  ;;  %s136_s9 = smov [#allocation3]  }
   0x2   :  { %s14_s10 = sshll.u32 %s136_s9, 4  ;;  %s15_s10 = int_to_ptr.vmem [resolvable:$true] %s14_s10 }
   0x3   :  { %s100_s11 = scalar_lea.vmem %s15_s10, 256  ;;  %p105_p1 = scmp.lt.s32.totalorder %s15_s10, %s15_s10 }
   0x4   :  { %p101_p0 = scmp.ne.s32.totalorder %s15_s10, %s100_s11  ;;  %p106_p2 = scmp.lt.s32.totalorder %s100_s11, %s100_s11 }
   0x6   :  { %p107_p3 = por %p106_p2, %p105_p1 }
   0x8   :  { %p108_p4 = pnand %p107_p3, %p101_p0 }
   0xa   :  { %111 = shalt.err (!%p108_p4)
}
   0xb   :  { %s137_s12 = smov 128   ;;  %s138_s13 = smov 8  }
   0xc   :  { %20 = dma.hbm_to_vmem [thread:$0]  %s169_s0, 256, %s15_s10, [#allocation4], %s137_s12, %s137_s12, %s138_s13  }
   0xd   :  { %132 = dma.done.wait [#allocation4], 256  }
   0xe   :  { %133 = vsyncadd [#allocation4], 4294967040  ;;  %vm30_vm0 = vcmask 254976   ;;  %v139_v0 = vmov 0   ;;  %v140_v1 = vmov 0.0   ;;  %vm35_vm1 = vcmask 261120  }
   0xf   :  { %91 = vset.pattern.permute.xlu0 %v139_v0  ;;  %31 = vst.msk [vmem:[#allocation2] sm:$0x3] %vm30_vm0, %v140_v1  ;;  %v62_v2 = vld [vmem:[%s170_s1] sm:$0x3]  ;;  %v33_v3 = vld [vmem:[#allocation3] sm:$0xff]  ;;  %v34_v4 = vld [vmem:[#allocation3 + $0x8] sm:$0xff] }
  0x10   :  { %65 = vperm.xlu0 %91, %v62_v2   ;;  %v36_v5 = vsel %vm35_vm1, %v33_v3, 0.0  ;;  %v43_v6 = vsel %vm35_vm1, %v34_v4, 0.0  ;;  %vm52_vm2 = vcmask 1041409   ;;  %s141_s0 = smov [#allocation6]  }
  0x11   :  { %v37_v7 = vrot.slane %v36_v5, 4  ;;  %v44_v8 = vrot.slane %v43_v6, 4  ;;  %s76_s1 = sshll.u32 %s141_s0, 4  ;;  %s77_s1 = int_to_ptr.vmem [resolvable:$true] %s76_s1 }
  0x12   :  { %s112_s18 = scalar_lea.vmem %s77_s1, 32  ;;  %p117_p6 = scmp.lt.s32.totalorder %s77_s1, %s77_s1 }
  0x13   :  { %v38_v9 = vadd.f32 %v37_v7, %v36_v5  ;;  %v45_v10 = vadd.f32 %v44_v8, %v43_v6  ;;  %p113_p5 = scmp.ne.s32.totalorder %s77_s1, %s112_s18  ;;  %p118_p7 = scmp.lt.s32.totalorder %s112_s18, %s112_s18 }
  0x15   :  { %v39_v11 = vrot.slane %v38_v9, 2  ;;  %v46_v12 = vrot.slane %v45_v10, 2  ;;  %p119_p8 = por %p118_p7, %p117_p6 }
  0x16   :  { %v32_v17 = vld [vmem:[#allocation2] sm:$0x3] }
  0x17   :  { %v40_v13 = vadd.f32 %v39_v11, %v38_v9  ;;  %v47_v14 = vadd.f32 %v46_v12, %v45_v10  ;;  %p120_p9 = pnand %p119_p8, %p113_p5 }
  0x19   :  { %v41_v15 = vrot.slane %v40_v13, 1  ;;  %v48_v16 = vrot.slane %v47_v14, 1 }
  0x1b   :  { %v42_v18 = vadd.f32 %v41_v15, %v40_v13  ;;  %v49_v19 = vadd.f32 %v48_v16, %v47_v14 }
  0x1d   :  { %v53_v20 = vsel %vm52_vm2, %v49_v19, %v42_v18 }
  0x1e   :  { %v55_v21 = vadd.f32 %v53_v20, %v32_v17 }
  0x20   :  { %57 = vst.msk [vmem:[#allocation2] sm:$0x3] %vm30_vm0, %v55_v21 }
  0x27   :  { %v61_v22 = vld [vmem:[#allocation2] sm:$0x3] }
  0x8b   :  { %v66_v23 = vpop.permute.xlu0 %65 }
  0x8c   :  { %v68_v24 = vmul.f32 %v66_v23, %v61_v22 }
  0x8e   :  { %69 = vst.msk [vmem:[#allocation6] sm:$0x3] %vm30_vm0, %v68_v24 }
  0x8f   :  { %123 = shalt.err (!%p120_p9)
}
  0x90   :  { %79 = dma.vmem_to_hbm [thread:$0]  %s77_s1, 32, %s171_s2, [#allocation5]  }
  0x91   :  { %134 = dma.done.wait [#allocation5], 32  }
  0x92   :  { %135 = vsyncadd [#allocation5], 4294967264 }
  0x93   :  { %83 = vsyncpa [#allocation4], 1 }
  0x94   :  { %84 = vsyncpa [#allocation5], 1 }

</bundles_post_ra>
